<compile_context>
chip_gen: v5e
topology: v5e:2x2
jax: 0.10.0
libtpu: 0.0.40
codegen_flags: <defaults>
</compile_context>

<pallas_src>
import jax
import jax.numpy as jnp
from jax.experimental import pallas as pl
from jax.experimental.pallas import tpu as pltpu

EPS = 1e-6


def _cosine_loss_kernel(p_ref, t_ref, o_ref):
    # p_ref, t_ref: (C, TILE) VMEM tiles (C on sublanes, TILE lanes).
    # o_ref: (8, 128) f32 per-batch partial-sum slab, resident across the tile axis.
    j = pl.program_id(1)

    p = p_ref[...].astype(jnp.float32)
    t = t_ref[...].astype(jnp.float32)

    # PyTorch-style cosine_similarity over dim=1: w12 / sqrt(clamp(w1 * w2, eps^2))
    w12 = jnp.sum(p * t, axis=0, keepdims=True)   # (1, TILE)
    w1 = jnp.sum(p * p, axis=0, keepdims=True)    # (1, TILE)
    w2 = jnp.sum(t * t, axis=0, keepdims=True)    # (1, TILE)
    cos = w12 * jax.lax.rsqrt(jnp.maximum(w1 * w2, EPS * EPS))
    partial = jnp.sum(1.0 - cos)                  # scalar sum over this tile

    @pl.when(j == 0)
    def _():
        o_ref[...] = jnp.zeros_like(o_ref)

    o_ref[...] += partial                          # broadcast-add into the slab


def _pick_tile(hw, max_tile=8192):
    """Largest multiple-of-128 divisor of hw (capped), else the full extent."""
    if hw % 128 != 0:
        return hw  # full-extent block (allowed by the (8,128) rule)
    for cand in (8192, 4096, 2048, 1024, 512, 384, 256, 128):
        if cand <= max_tile and cand <= hw and hw % cand == 0:
            return cand
    return hw


def cosine_similarity_loss(pred, tar, *, max_tile=8192):
    """pred, tar: NCHW arrays [B, C, H, W]. Returns scalar mean(1 - cos_sim_dim1)."""
    B, C, H, W = pred.shape
    HW = H * W
    N = B * HW

    # Free reshapes only — no transpose, no extra HBM copy.
    p3 = pred.reshape(B, C, HW)
    t3 = tar.reshape(B, C, HW)

    tile = _pick_tile(HW, max_tile)
    n_tiles = HW // tile

    itemsize = jnp.dtype(pred.dtype).itemsize
    cost = pl.CostEstimate(
        flops=8 * B * C * HW,            # 3 fused mul-add streams + epilogue
        transcendentals=B * HW,          # rsqrt per position
        bytes_accessed=2 * B * C * HW * itemsize + B * 8 * 128 * 4,
    )

    partials = pl.pallas_call(
        _cosine_loss_kernel,
        out_shape=jax.ShapeDtypeStruct((B, 8, 128), jnp.float32),
        grid=(B, n_tiles),
        in_specs=[
            pl.BlockSpec((None, C, tile), lambda b, j: (b, 0, j)),
            pl.BlockSpec((None, C, tile), lambda b, j: (b, 0, j)),
        ],
        out_specs=pl.BlockSpec((None, 8, 128), lambda b, j: (b, 0, 0)),
        compiler_params=pltpu.CompilerParams(
            dimension_semantics=("parallel", "arbitrary")),
        cost_estimate=cost,
    )(p3, t3)

    # Each (8,128) slab holds that batch's sum of (1 - cos) broadcast everywhere.
    total = jnp.sum(partials[:, 0, 0])
    return total / jnp.float32(N)


def _reference(pred, tar):
    w12 = jnp.sum(pred * tar, axis=1)
    w1 = jnp.sum(pred * pred, axis=1)
    w2 = jnp.sum(tar * tar, axis=1)
    cos = w12 / jnp.sqrt(jnp.maximum(w1 * w2, EPS * EPS))
    return jnp.mean(1.0 - cos)


if __name__ == "__main__":
    key = jax.random.PRNGKey(0)
    k1, k2 = jax.random.split(key)
    B, C, H, W = 2, 4, 16, 16
    pred = jax.random.normal(k1, (B, C, H, W), dtype=jnp.float32)
    tar = jax.random.normal(k2, (B, C, H, W), dtype=jnp.float32)

    loss = cosine_similarity_loss(pred, tar)
    loss = jax.block_until_ready(loss)

    ref = _reference(pred, tar)
    assert jnp.allclose(loss, ref, atol=1e-5, rtol=1e-5), (loss, ref)
    print("KERNEL_OK")
</pallas_src>

<mosaic_0001>
module attributes {stable_mosaic.version = 11 : i64} {
  func.func @_cosine_loss_kernel(%arg0: i32, %arg1: i32, %arg2: memref<1x4x256xf32, #tpu.memory_space<vmem>>, %arg3: memref<1x4x256xf32, #tpu.memory_space<vmem>>, %arg4: memref<1x8x128xf32, #tpu.memory_space<vmem>>) attributes {dimension_semantics = [#tpu.dimension_semantics<parallel>, #tpu.dimension_semantics<arbitrary>], iteration_bounds = array<i64: 2, 1>, scalar_prefetch = 0 : i64, scratch_operands = 0 : i64, tpu.core_type = #tpu.core_type<tc>, window_params = [{transform_indices = @transform_0, window_bounds = array<i64: 1, 4, 256>}, {transform_indices = @transform_1, window_bounds = array<i64: 1, 4, 256>}, {transform_indices = @transform_2, window_bounds = array<i64: 1, 8, 128>}]} {
    %c0 = arith.constant 0 : index
    %c0_0 = arith.constant 0 : index
    %c0_1 = arith.constant 0 : index
    %0 = vector.load %arg2[%c0, %c0_0, %c0_1] : memref<1x4x256xf32, #tpu.memory_space<vmem>>, vector<1x4x256xf32>
    %1 = vector.shape_cast %0 : vector<1x4x256xf32> to vector<4x256xf32>
    %c0_2 = arith.constant 0 : index
    %c0_3 = arith.constant 0 : index
    %c0_4 = arith.constant 0 : index
    %2 = vector.load %arg3[%c0_2, %c0_3, %c0_4] : memref<1x4x256xf32, #tpu.memory_space<vmem>>, vector<1x4x256xf32>
    %3 = vector.shape_cast %2 : vector<1x4x256xf32> to vector<4x256xf32>
    %4 = arith.mulf %1, %3 : vector<4x256xf32>
    %cst = arith.constant dense<0.000000e+00> : vector<256xf32>
    %5 = vector.multi_reduction <add>, %4, %cst [0] : vector<4x256xf32> to vector<256xf32>
    %6 = vector.shape_cast %5 : vector<256xf32> to vector<1x256xf32>
    %7 = arith.mulf %1, %1 : vector<4x256xf32>
    %cst_5 = arith.constant dense<0.000000e+00> : vector<256xf32>
    %8 = vector.multi_reduction <add>, %7, %cst_5 [0] : vector<4x256xf32> to vector<256xf32>
    %9 = vector.shape_cast %8 : vector<256xf32> to vector<1x256xf32>
    %10 = arith.mulf %3, %3 : vector<4x256xf32>
    %cst_6 = arith.constant dense<0.000000e+00> : vector<256xf32>
    %11 = vector.multi_reduction <add>, %10, %cst_6 [0] : vector<4x256xf32> to vector<256xf32>
    %12 = vector.shape_cast %11 : vector<256xf32> to vector<1x256xf32>
    %13 = arith.mulf %9, %12 : vector<1x256xf32>
    %cst_7 = arith.constant 9.99999996E-13 : f32
    %14 = vector.broadcast %cst_7 : f32 to vector<1x256xf32>
    %15 = arith.maximumf %13, %14 : vector<1x256xf32>
    %16 = math.rsqrt %15 : vector<1x256xf32>
    %17 = arith.mulf %6, %16 : vector<1x256xf32>
    %cst_8 = arith.constant 1.000000e+00 : f32
    %18 = vector.broadcast %cst_8 : f32 to vector<1x256xf32>
    %19 = arith.subf %18, %17 : vector<1x256xf32>
    %20 = vector.shape_cast %19 : vector<1x256xf32> to vector<1x1x256xf32>
    %cst_9 = arith.constant dense<0.000000e+00> : vector<1xf32>
    %21 = vector.multi_reduction <add>, %20, %cst_9 [1, 2] : vector<1x1x256xf32> to vector<1xf32>
    %22 = vector.shape_cast %21 : vector<1xf32> to vector<1x1x1xf32>
    %23 = vector.extract %22[0, 0, 0] : f32 from vector<1x1x1xf32>
    %c0_i32 = arith.constant 0 : i32
    %24 = arith.cmpi eq, %arg1, %c0_i32 : i32
    %25 = arith.extui %24 : i1 to i32
    %c0_i32_10 = arith.constant 0 : i32
    %26 = arith.cmpi ne, %25, %c0_i32_10 : i32
    scf.if %26 {
      %cst_17 = arith.constant 0.000000e+00 : f32
      %34 = vector.broadcast %cst_17 : f32 to vector<8x128xf32>
      %c0_18 = arith.constant 0 : index
      %c0_19 = arith.constant 0 : index
      %c0_20 = arith.constant 0 : index
      %35 = vector.load %arg4[%c0_18, %c0_19, %c0_20] : memref<1x8x128xf32, #tpu.memory_space<vmem>>, vector<1x8x128xf32>
      %36 = vector.shape_cast %35 : vector<1x8x128xf32> to vector<8x128xf32>
      %37 = vector.shape_cast %34 : vector<8x128xf32> to vector<1x8x128xf32>
      tpu.vector_store %arg4[%c0_18, %c0_19, %c0_20], %37 {strides = array<i32>} : memref<1x8x128xf32, #tpu.memory_space<vmem>>, vector<1x8x128xf32>,
    } else {
    }
    %c0_11 = arith.constant 0 : index
    %c0_12 = arith.constant 0 : index
    %c0_13 = arith.constant 0 : index
    %27 = vector.load %arg4[%c0_11, %c0_12, %c0_13] : memref<1x8x128xf32, #tpu.memory_space<vmem>>, vector<1x8x128xf32>
    %28 = vector.shape_cast %27 : vector<1x8x128xf32> to vector<8x128xf32>
    %29 = vector.broadcast %23 : f32 to vector<8x128xf32>
    %30 = arith.addf %28, %29 : vector<8x128xf32>
    %c0_14 = arith.constant 0 : index
    %c0_15 = arith.constant 0 : index
    %c0_16 = arith.constant 0 : index
    %31 = vector.load %arg4[%c0_14, %c0_15, %c0_16] : memref<1x8x128xf32, #tpu.memory_space<vmem>>, vector<1x8x128xf32>
    %32 = vector.shape_cast %31 : vector<1x8x128xf32> to vector<8x128xf32>
    %33 = vector.shape_cast %30 : vector<8x128xf32> to vector<1x8x128xf32>
    tpu.vector_store %arg4[%c0_14, %c0_15, %c0_16], %33 {strides = array<i32>} : memref<1x8x128xf32, #tpu.memory_space<vmem>>, vector<1x8x128xf32>,
    return
  }
  func.func @transform_0(%arg0: i32, %arg1: i32) -> (i32, i32, i32) {
    %c0_i32 = arith.constant 0 : i32
    %c0_i32_0 = arith.constant 0 : i32
    return %arg0, %c0_i32, %arg1 : i32, i32, i32
  }
  func.func @transform_1(%arg0: i32, %arg1: i32) -> (i32, i32, i32) {
    %c0_i32 = arith.constant 0 : i32
    %c0_i32_0 = arith.constant 0 : i32
    return %arg0, %c0_i32, %arg1 : i32, i32, i32
  }
  func.func @transform_2(%arg0: i32, %arg1: i32) -> (i32, i32, i32) {
    %c0_i32 = arith.constant 0 : i32
    %c0_i32_0 = arith.constant 0 : i32
    %c0_i32_1 = arith.constant 0 : i32
    return %arg0, %c0_i32, %c0_i32_0 : i32, i32, i32
  }
}

</mosaic_0001>

<bundles_post_ra>
// kernel: tpu_custom_call.1
= control target key start
LH: loop header
LB: loop body
LE: loop exit
PB: predicated region body
PF: predicated region fallthrough
CT: control target
= control target key end

     0   :  { %7 = vsyncpa [#allocation3], 0  ;;  %s859_s0 = inlined_call_operand.hbm [shape: f32[2,4,256], index: 0, kind: input, shape index: {}]   ;;  %s860_s1 = inlined_call_operand.hbm [shape: f32[2,4,256], index: 1, kind: input, shape index: {}]   ;;  %s861_s2 = inlined_call_operand.hbm [shape: f32[2,8,128], index: 2, kind: output, shape index: {}]  }
   0x1   :  { %9 = vsyncpa [#allocation3 + $0x1], 0 }
   0x2   :  { %10 = vsyncpa [#allocation6], 0 }
   0x3   :  { %12 = vsyncpa [#allocation6 + $0x1], 0 }
   0x4   :  { %13 = vsyncpa [#allocation4], 0 }
   0x5   :  { %15 = vsyncpa [#allocation4 + $0x1], 0  ;;  %s720_s9 = smov 0   ;;  %s722_s10 = smov 0  }
   0x6   :  { %s724_s11 = smov 0   ;;  %s726_s12 = smov 0  }
   0x7   :  { %s728_s13 = smov 0   ;;  %s730_s14 = smov 0  }
   0x8 LB: > { %s463_s15 = sadd.s32 4294967295, %s703_s14   ;;  %s464_s16 = sadd.s32 4294967294, %s703_s14   ;;  %s703_s14 = sphi %s730_s14, %s21_s14   ;;  %s699_s13 = sphi %s728_s13, %s870_s13   ;;  %s695_s12 = sphi %s726_s12, %s869_s12   ;;  %s691_s11 = sphi %s724_s11, %s868_s11   ;;  %s687_s10 = sphi %s722_s10, %s867_s10   ;;  %s683_s9 = sphi %s720_s9, %s866_s9  }
   0x9   : > { %s33_s17 = sadd.s32 1, %s699_s13  ;;  %s42_s18 = sadd.s32 1, %s691_s11 }
   0xa   : > { %p35_p0 = scmp.ge.s32.totalorder %s33_s17, 2  ;;  %p49_p1 = scmp.ne.s32.totalorder %s691_s11, %s687_s10 }
   0xb   : > { %p50_p2 = scmp.eq.s32.totalorder %s703_s14, 0  ;;  %p55_p3 = scmp.ne.s32.totalorder %s687_s10, %s683_s9 }
   0xc   : > { %s872_s17 = smov (%p35_p0, %s33_s17), 0  ;;  %p56_p5 = scmp.eq.s32.totalorder %s463_s15, 0 }
   0xd   : > { %p761_p4 = por %p50_p2, %p49_p1  ;;  %s37_s20 = ssub.s32 %s699_s13, %s872_s17 }
   0xe   : > { %p107_p6 = scmp.eq.s32.totalorder %s463_s15, 1  ;;  %p40_p7 = scmp.eq.s32.totalorder %s37_s20, 0 }
   0xf   : > { %p767_p8 = por %p56_p5, %p55_p3  ;;  %p113_p10 = scmp.eq.s32.totalorder %s464_s16, 1 }
  0x10   : > { %p771_p9 = por %p107_p6, %p49_p1  ;;  %p466_p12 = scmp.ge.s32.totalorder %s703_s14, 2 }
  0x11   : > { %s776_s23 = scalar_select %p40_p7, %s691_s11, %s42_s18  }
  0x12   : > { %p778_p11 = por %p113_p10, %p55_p3  ;;  %p502_p13 = scmp.lt.s32.totalorder %s703_s14, 2 }
  0x13   : > { %s133_s25 = sand.u32 1, %s691_s11   ;;  %s481_s27 = sshll.u32 %s699_s13, 3 }
  0x14   : > { %s467_s26 = sshll.u32 %s133_s25, 3  ;;  %s144_s30 = scalar_lea.hbm %s859_s0, %s481_s27 }
  0x15   : > { %s137_s3 = scalar_lea.vmem [#allocation2], %s467_s26  ;;  %s146_s5 = sshll.u32 %s144_s30, 4  ;;  %s147_s5 = int_to_ptr.hbm [resolvable:$true] %s146_s5 }
  0x16   : > { %s148_s4 = sshll.u32 %s137_s3, 4  ;;  %p492_p0 = pnand %p502_p13, %p761_p4  ;;  %s149_s4 = int_to_ptr.vmem [resolvable:$true] %s148_s4 }
  0x17   : > { %p473_p1 = scmp.ge.s32.totalorder %s703_s14, 1  ;;  %p175_p2 = scmp.lt.s32.totalorder %s703_s14, 3 }
  0x18   : > { %s134_s6 = scalar_lea.sflag [#allocation3], %s133_s25  ;;  %s166_s15 = scalar_lea.hbm %s860_s1, %s481_s27 }
  0x19   : > { %494 = dma.hbm_to_vmem [thread:$0]  (!%p492_p0), %s147_s5, 128, %s149_s4, %s134_s6  }
  0x1a   : > { %p176_p3 = pnand %p473_p1, %p175_p2  ;;  %s159_s16 = scalar_lea.vmem [#allocation5], %s467_s26 }
  0x1b   : > { %s170_s18 = sshll.u32 %s159_s16, 4  ;;  %s168_s20 = sshll.u32 %s166_s15, 4  ;;  %s171_s18 = int_to_ptr.vmem [resolvable:$true] %s170_s18  ;;  %s169_s20 = int_to_ptr.hbm [resolvable:$true] %s168_s20 }
  0x1c   : > { %s156_s28 = scalar_lea.sflag [#allocation6], %s133_s25  ;;  %179 = sbr.rel (%p176_p3) target bundleno = 288 (0x120), region = 28 }
  0x1d   : > { %497 = dma.hbm_to_vmem [thread:$0]  (!%p492_p0), %s169_s20, 128, %s171_s18, %s156_s28  }
  0x1e   : > { %s797_s19 = sand.u32 (!%p176_p3), 1, %s687_s10  }
  0x1f   : > { %s800_s29 = sshll.u32 (!%p176_p3), %s797_s19, 3  ;;  %s182_s30 = scalar_lea.sflag (!%p176_p3), [#allocation3], %s797_s19 }
  0x20   : > { %s185_s3 = scalar_lea.vmem (!%p176_p3), [#allocation2], %s800_s29 }
  0x21   : > { %670 = dma.done.wait (%p767_p8), %s182_s30, 128  }
  0x22   : > { %672 = vsyncadd (%p767_p8), %s182_s30, 4294967168  ;;  %s192_s25 = scalar_lea.sflag [#allocation6], %s797_s19  ;;  %s195_s26 = scalar_lea.vmem [#allocation5], %s800_s29 }
  0x23   : > { %674 = dma.done.wait (%p767_p8), %s192_s25, 128  }
  0x24   : > { %676 = vsyncadd (%p767_p8), %s192_s25, 4294967168  ;;  %v224_v0 = vld [vmem:[%s185_s3] sm:$0xff]  ;;  %v225_v1 = vld [vmem:[%s195_s26] sm:$0xff]  ;;  %vm233_vm0 = vcmask 1043456   ;;  %vm318_vm7 = vcmask 1040384   ;;  %s478_s21 = sshll.u32 %s695_s12, 3 }
  0x25   : > { %v226_v2 = vmul.f32 %v225_v1, %v224_v0  ;;  %v248_v3 = vmul.f32 %v224_v0, %v224_v0  ;;  %v269_v6 = vmul.f32 %v225_v1, %v225_v1  ;;  %s351_s5 = scalar_lea.hbm %s861_s2, %s478_s21  ;;  %s221_s6 = scalar_lea.vmem [#allocation7], %s800_s29 }
  0x26   : > { %s353_s7 = sshll.u32 %s221_s6, 4  ;;  %s355_s8 = sshll.u32 %s351_s5, 4  ;;  %s354_s7 = int_to_ptr.vmem [resolvable:$true] %s353_s7  ;;  %s356_s8 = int_to_ptr.hbm [resolvable:$true] %s355_s8 }
  0x27   : > { %228 = vst [vmem:[#allocation1] ss:$2 sm:$0xff] %v226_v2  ;;  %s341_s16 = scalar_lea.sflag [#allocation4], %s797_s19  ;;  %s631_s18 = sshra.s32 %s356_s8, 4  ;;  %s632_s18 = int_to_ptr.hbm [resolvable:$true] %s631_s18 }
  0x28   : > { %s633_s20 = scalar_lea.hbm %s632_s18, 8  ;;  %s637_s30 = scalar_lea.hbm %s861_s2, 16 }
  0x29   : > { %p634_p4 = scmp.ne.s32.totalorder %s632_s18, %s633_s20  ;;  %p638_p7 = scmp.lt.s32.totalorder %s632_s18, %s861_s2 }
  0x2a   : > { %p639_p8 = scmp.lt.s32.totalorder %s637_s30, %s633_s20 }
  0x2b   : > { %p635_p5 = pnand %p634_p4, %p771_p9 }
  0x2c   : > { %p640_p10 = por %p639_p8, %p638_p7 }
  0x2d   : > { %p636_p6 = pneg %p635_p5 }
  0x2e   : > { %v229_v4 = vld.sshfl [vmem:[#allocation1] sm:$0xff pattern:$0x75316420]  ;;  %v230_v5 = vld.sshfl [vmem:[#allocation1 + $0x8] sm:$0xff pattern:$0x75316420] }
  0x2f   : > { %250 = vst [vmem:[#allocation1] ss:$2 sm:$0xff] %v248_v3  ;;  %v234_v33 = vsel %vm233_vm0, %v229_v4, 0.0  ;;  %v241_v34 = vsel %vm233_vm0, %v230_v5, 0.0  ;;  %p641_p13 = pnand %p640_p10, %p636_p6 }
  0x30   : > { %v235_v39 = vrot.slane %v234_v33, 4  ;;  %v242_v42 = vrot.slane %v241_v34, 4 }
  0x32   : > { %v236_v45 = vadd.f32 %v235_v39, %v234_v33  ;;  %v243_v48 = vadd.f32 %v242_v42, %v241_v34 }
  0x34   : > { %v237_v49 = vrot.slane %v236_v45, 2  ;;  %v244_v50 = vrot.slane %v243_v48, 2 }
  0x36   : > { %v251_v7 = vld.sshfl [vmem:[#allocation1] sm:$0xff pattern:$0x75316420]  ;;  %v252_v8 = vld.sshfl [vmem:[#allocation1 + $0x8] sm:$0xff pattern:$0x75316420]  ;;  %v238_v52 = vadd.f32 %v237_v49, %v236_v45  ;;  %v245_v54 = vadd.f32 %v244_v50, %v243_v48 }
  0x37   : > { %v255_v9 = vsel %vm233_vm0, %v251_v7, 0.0  ;;  %v262_v10 = vsel %vm233_vm0, %v252_v8, 0.0  ;;  %271 = vst [vmem:[#allocation1] ss:$2 sm:$0xff] %v269_v6 }
  0x38   : > { %v256_v11 = vrot.slane %v255_v9, 4  ;;  %v263_v12 = vrot.slane %v262_v10, 4  ;;  %v239_v58 = vrot.slane %v238_v52, 1  ;;  %v246_v60 = vrot.slane %v245_v54, 1 }
  0x3a   : > { %v257_v13 = vadd.f32 %v256_v11, %v255_v9  ;;  %v264_v14 = vadd.f32 %v263_v12, %v262_v10  ;;  %v240_v0 = vadd.f32 %v239_v58, %v238_v52  ;;  %v247_v2 = vadd.f32 %v246_v60, %v245_v54 }
  0x3c   : > { %v258_v15 = vrot.slane %v257_v13, 2  ;;  %v265_v16 = vrot.slane %v264_v14, 2 }
  0x3e   : > { %v272_v17 = vld.sshfl [vmem:[#allocation1] sm:$0xff pattern:$0x75316420]  ;;  %v273_v18 = vld.sshfl [vmem:[#allocation1 + $0x8] sm:$0xff pattern:$0x75316420]  ;;  %v259_v21 = vadd.f32 %v258_v15, %v257_v13  ;;  %v266_v22 = vadd.f32 %v265_v16, %v264_v14 }
  0x3f   : > { %v276_v19 = vsel %vm233_vm0, %v272_v17, 0.0  ;;  %v283_v20 = vsel %vm233_vm0, %v273_v18, 0.0 }
  0x40   : > { %v277_v23 = vrot.slane %v276_v19, 4  ;;  %v284_v24 = vrot.slane %v283_v20, 4  ;;  %v260_v27 = vrot.slane %v259_v21, 1  ;;  %v267_v28 = vrot.slane %v266_v22, 1 }
  0x42   : > { %v278_v25 = vadd.f32 %v277_v23, %v276_v19  ;;  %v285_v26 = vadd.f32 %v284_v24, %v283_v20  ;;  %v261_v35 = vadd.f32 %v260_v27, %v259_v21  ;;  %v268_v36 = vadd.f32 %v267_v28, %v266_v22 }
  0x44   : > { %v279_v29 = vrot.slane %v278_v25, 2  ;;  %v286_v30 = vrot.slane %v285_v26, 2 }
  0x46   : > { %v280_v31 = vadd.f32 %v279_v29, %v278_v25  ;;  %v287_v32 = vadd.f32 %v286_v30, %v285_v26 }
  0x48   : > { %v281_v37 = vrot.slane %v280_v31, 1  ;;  %v288_v38 = vrot.slane %v287_v32, 1 }
  0x4a   : > { %v282_v40 = vadd.f32 %v281_v37, %v280_v31  ;;  %v289_v41 = vadd.f32 %v288_v38, %v287_v32 }
  0x4c   : > { %v290_v43 = vmul.f32 %v282_v40, %v261_v35  ;;  %v291_v44 = vmul.f32 %v289_v41, %v268_v36 }
  0x4e   : > { %v292_v46 = vmax.f32 %v290_v43, 1e-12  ;;  %v293_v47 = vmax.f32 %v291_v44, 1e-12 }
  0x50   : > { %553 = vrsqrt.f32 %v292_v46  ;;  %vm300_vm1 = vweird.f32 %v292_v46  ;;  %vm310_vm3 = vweird.f32 %v293_v47 }
  0x51   : > { %555 = vrsqrt.f32 %v293_v47 }
  0x56   : > { %v554_v51 = vpop.eup %553 }
  0x57   : > { %v556_v53 = vpop.eup %555  ;;  %v295_v55 = vmul.f32 %v554_v51, %v292_v46  ;;  %vm301_vm2 = vweird.f32 %v554_v51 }
  0x58   : > { %v305_v56 = vmul.f32 %v556_v53, %v293_v47  ;;  %vm311_vm4 = vweird.f32 %v556_v53  ;;  %vm302_vm5 = vmor %vm300_vm1, %vm301_vm2 }
  0x59   : > { %v296_v57 = vmul.f32 %v554_v51, %v295_v55  ;;  %vm312_vm6 = vmor %vm310_vm3, %vm311_vm4 }
  0x5a   : > { %v306_v59 = vmul.f32 %v556_v53, %v305_v56 }
  0x5b   : > { %v297_v61 = vmul.f32 0.5, %v296_v57 }
  0x5c   : > { %v307_v62 = vmul.f32 0.5, %v306_v59 }
  0x5d   : > { %v298_v63 = vsub.f32 1.5, %v297_v61 }
  0x5e   : > { %v308_v1 = vsub.f32 1.5, %v307_v62 }
  0x5f   : > { %v299_v3 = vmul.f32 %v554_v51, %v298_v63 }
  0x60   : > { %v309_v4 = vmul.f32 %v556_v53, %v308_v1 }
  0x61   : > { %v303_v5 = vsel %vm302_vm5, %v554_v51, %v299_v3 }
  0x62   : > { %v313_v6 = vsel %vm312_vm6, %v556_v53, %v309_v4  ;;  %v314_v7 = vmul.f32 %v303_v5, %v240_v0 }
  0x63   : > { %v315_v8 = vmul.f32 %v313_v6, %v247_v2 }
  0x64   : > { %v316_v9 = vsub.f32 1.0, %v314_v7 }
  0x65   : > { %v317_v10 = vsub.f32 1.0, %v315_v8 }
  0x66   : > { %v319_v11 = vsel %vm318_vm7, %v316_v9, 0.0 }
  0x67   : > { %v320_v12 = vsel %vm318_vm7, %v317_v10, 0.0 }
  0x68   : > { %v321_v13 = vadd.f32 %v320_v12, %v319_v11 }
  0x6a   : > { %322 = vadd.xlane.f32.xlu0 %v321_v13 }
  0xdd   : > { %v323_v14 = vpop.xlane.xlu0 %322 }
  0xde   : > { %v324_v15 = vrot.slane %v323_v14, 4 }
  0xe0   : > { %v325_v16 = vadd.f32 %v324_v15, %v323_v14 }
  0xe2   : > { %v326_v17 = vrot.slane %v325_v16, 2 }
  0xe4   : > { %v327_v18 = vadd.f32 %v326_v17, %v325_v16 }
  0xe6   : > { %v328_v19 = vrot.slane %v327_v18, 1 }
  0xe8   : > { %v329_v20 = vadd.f32 %v328_v19, %v327_v18 }
  0xea   : > { %483 = vpush %v329_v20 }
 0x11b   : > { %s484_s15 = spop %483 }
 0x11c   : > { %v337_v21 = vstv %s484_s15 }
 0x11d   : > { %339 = vst [vmem:[%s221_s6] sm:$0xff] %v337_v21 }
 0x11e   : > { %644 = shalt.err (!%p641_p13)
}
 0x11f   : > { %489 = dma.vmem_to_hbm [thread:$0]  (%p771_p9), %s354_s7, 128, %s356_s8, %s341_s16  }
 0x120 PF: > { %s367_s19 = sand.u32 1, %s683_s9   ;;  %p499_p0 = pnand %p466_p12, %p778_p11 }
 0x121   : > { %s368_s25 = scalar_lea.sflag [#allocation4], %s367_s19 }
 0x122   : > { %p500_p1 = pneg %p499_p0 }
 0x124   : > { %678 = dma.done.wait (%p500_p1), %s368_s25, 128  }
 0x125   : > { %680 = vsyncadd (%p500_p1), %s368_s25, 4294967168  ;;  %s21_s14 = sadd.s32 1, %s703_s14   ;;  %s866_s9 = smov %s687_s10 }
 0x126   : > { %p18_p2 = scmp.ge.s32.totalorder %s21_s14, 4   ;;  %s867_s10 = smov %s691_s11 }
 0x127   : > { %s868_s11 = smov %s776_s23  ;;  %s869_s12 = smov %s699_s13 }
 0x128   : > { %s870_s13 = smov %s872_s17  ;;  %20 = sbr.rel (!%p18_p2) target bundleno = 8 (0x8), region = 90 }
 0x12d   :  { %374 = vsyncpa [#allocation3], 1 }
 0x12e   :  { %376 = vsyncpa [#allocation3 + $0x1], 1 }
 0x12f   :  { %377 = vsyncpa [#allocation6], 1 }
 0x130   :  { %379 = vsyncpa [#allocation6 + $0x1], 1 }
 0x131   :  { %380 = vsyncpa [#allocation4], 1 }
 0x132   :  { %382 = vsyncpa [#allocation4 + $0x1], 1 }

</bundles_post_ra>
